<compile_context>
chip_gen: v7x
topology: tpu7x:2x2x1
jax: 0.10.0
libtpu: 0.0.40
codegen_flags: <defaults>
</compile_context>

<pallas_src>
import jax
import jax.numpy as jnp
from jax.experimental import pallas as pl
from jax.experimental.pallas import tpu as pltpu

LANES = 128          # vreg lane width; last-dim blocks should be multiples of this
SUBLANES_BF16 = 16   # bf16 packs 16 rows per vreg


def _round_up(v, m):
    return ((v + m - 1) // m) * m


def clustering_kernel(x_ref, w1_ref, b1_ref, w2_ref, b2_ref, w3_ref, b3_ref, o_ref):
    # Biases read once per invocation; (1, N) rows broadcast implicitly. Keep f32.
    b1 = b1_ref[...]
    b2 = b2_ref[...]
    b3 = b3_ref[...]

    # Layer 1: Linear(input_dim_pad, 256) + ReLU.  K was padded to a multiple of 128
    # in the wrapper -> lane-dense x loads and a dense MXU contraction.
    h1 = jnp.dot(x_ref[...], w1_ref[...], preferred_element_type=jnp.float32) + b1
    h1 = jnp.maximum(h1, 0.0)

    # Layer 2: Linear(256, 128) + ReLU.
    h2 = jnp.dot(h1.astype(jnp.bfloat16), w2_ref[...],
                 preferred_element_type=jnp.float32) + b2
    h2 = jnp.maximum(h2, 0.0)

    # Layer 3: Linear(128, n_pad).  Padded cluster lanes carry bias -1e30 (f32) so
    # exp() on them is exactly 0 and softmax over the real lanes is unaffected.
    # (K=128 half-fills the 256-deep MXU on v6e/v7x; inherent to the model widths.)
    logits = jnp.dot(h2.astype(jnp.bfloat16), w3_ref[...],
                     preferred_element_type=jnp.float32) + b3

    # Numerically stable softmax over the cluster axis, f32 throughout.
    m = jnp.max(logits, axis=1, keepdims=True)
    e = jnp.exp(logits - m)
    denom = jnp.sum(e, axis=1, keepdims=True)
    # EUP approx reciprocal (off the VALU critical path) + one Newton step so the
    # normalization is ~exact (addresses the approx-reciprocal correctness concern).
    r = pl.reciprocal(denom, approx=True)
    r = r * (2.0 - denom * r)
    o_ref[...] = (e * r).astype(o_ref.dtype)


def clustering_network(x, params, *, tile_b=None, out_dtype=jnp.float32):
    """Forward pass of ClusteringNetwork.  x: (batch, input_dim) float32."""
    w1, b1, w2, b2, w3, b3 = params
    batch, input_dim = x.shape
    n_clusters = w3.shape[1]

    # --- pad the contraction dim (input_dim) up to a multiple of 128 lanes -------
    k_pad = _round_up(max(input_dim, LANES), LANES)
    if k_pad != input_dim:
        x = jnp.pad(x, ((0, 0), (0, k_pad - input_dim)))
        w1 = jnp.pad(w1, ((0, k_pad - input_dim), (0, 0)))

    # --- pad the cluster dim to a full 128-lane width (lane-dense last matmul and
    #     unmasked output stores).  Padded lanes: bias = -1e30 (must stay f32). -----
    n_pad = _round_up(max(n_clusters, LANES), LANES)
    if n_pad != n_clusters:
        w3 = jnp.pad(w3, ((0, 0), (0, n_pad - n_clusters)))
        b3 = jnp.pad(b3, ((0, 0), (0, n_pad - n_clusters)), constant_values=-1e30)

    # --- batch tile selection -----------------------------------------------------
    #  * multiples of 16 (bf16 sublane packing)
    #  * small/medium batches -> a single grid step (amortize ~0.35us/step overhead)
    #  * large batches -> 512-row tiles (measured ~85% of HBM roofline)
    #  * odd multi-step grids rebalanced to an even count (v7x dual-TC sharding),
    #    but never shrinking tiles below 256 rows just to get there.
    batch16 = _round_up(batch, SUBLANES_BF16)
    if tile_b is None:
        tile_b = batch16 if batch16 <= 512 else 512
    tile_b = min(_round_up(max(tile_b, SUBLANES_BF16), SUBLANES_BF16), batch16)
    n_steps = -(-batch16 // tile_b)
    if n_steps > 1 and n_steps % 2 == 1:
        cand = _round_up(-(-batch16 // (n_steps + 1)), SUBLANES_BF16)
        if cand >= 256:
            tile_b = cand
            n_steps = -(-batch16 // tile_b)
    batch_pad = n_steps * tile_b
    if batch_pad != batch:
        x = jnp.pad(x, ((0, batch_pad - batch), (0, 0)))

    # --- dtypes: bf16 into the MXU, f32 biases / elementwise / softmax -------------
    xp = x.astype(jnp.bfloat16)
    w1b, w2b, w3b = (w.astype(jnp.bfloat16) for w in (w1, w2, w3))
    b1f, b2f, b3f = (b.astype(jnp.float32) for b in (b1, b2, b3))

    def resident(arr):  # same block every grid step -> DMA'd once, stays in VMEM
        return pl.BlockSpec(arr.shape, lambda i: (0, 0))

    out = pl.pallas_call(
        clustering_kernel,
        # bf16 padded output halves HBM writeback for the 16x-padded cluster dim.
        out_shape=jax.ShapeDtypeStruct((batch_pad, n_pad), jnp.bfloat16),
        grid=(n_steps,),
        in_specs=[
            pl.BlockSpec((tile_b, k_pad), lambda i: (i, 0)),  # stream x tiles
            resident(w1b), resident(b1f),
            resident(w2b), resident(b2f),
            resident(w3b), resident(b3f),
        ],
        out_specs=pl.BlockSpec((tile_b, n_pad), lambda i: (i, 0)),
        compiler_params=pltpu.CompilerParams(
            dimension_semantics=("parallel",),  # shards batch tiles across v7x TCs
        ),
    )(xp, w1b, b1f, w2b, b2f, w3b, b3f)

    return out[:batch, :n_clusters].astype(out_dtype)


def init_params(key, input_dim, n_clusters):
    """Deterministic synthetic params (PyTorch-Linear-like uniform init), f32."""
    ks = jax.random.split(key, 6)

    def linear(kw, kb, fan_in, fan_out):
        bound = 1.0 / jnp.sqrt(fan_in)
        w = jax.random.uniform(kw, (fan_in, fan_out), jnp.float32, -bound, bound)
        b = jax.random.uniform(kb, (1, fan_out), jnp.float32, -bound, bound)
        return w, b

    w1, b1 = linear(ks[0], ks[1], input_dim, 256)
    w2, b2 = linear(ks[2], ks[3], 256, 128)
    w3, b3 = linear(ks[4], ks[5], 128, n_clusters)
    return (w1, b1, w2, b2, w3, b3)


def reference_forward(x, params):
    """Pure-f32 reference matching the PyTorch module semantics."""
    w1, b1, w2, b2, w3, b3 = params
    h1 = jnp.maximum(x @ w1 + b1, 0.0)
    h2 = jnp.maximum(h1 @ w2 + b2, 0.0)
    return jax.nn.softmax(h2 @ w3 + b3, axis=1)


if __name__ == "__main__":
    key = jax.random.PRNGKey(0)
    k_x, k_p = jax.random.split(key)

    batch, input_dim, n_clusters = 64, 32, 8
    x = jax.random.normal(k_x, (batch, input_dim), jnp.float32)
    params = init_params(k_p, input_dim, n_clusters)
    ref = reference_forward(x, params)

    # Default tile selection -> one (64, 128) bf16 tile, single grid step.
    out = jax.block_until_ready(clustering_network(x, params))
    assert out.shape == (batch, n_clusters)
    # bf16 matmul operands + bf16 output store -> relaxed (1e-2) tolerance; the
    # Newton-refined reciprocal keeps row sums ~exact.
    assert jnp.allclose(out, ref, atol=1e-2, rtol=1e-2)
    assert jnp.allclose(jnp.sum(out, axis=1), 1.0, atol=1e-2)

    # Multi-tile path: non-multiple-of-16 batch, forced 128-row tiles -> 3 grid
    # steps streaming x/out with the weights VMEM-resident across steps.
    x2 = jax.random.normal(jax.random.PRNGKey(1), (300, input_dim), jnp.float32)
    out2 = jax.block_until_ready(clustering_network(x2, params, tile_b=128))
    ref2 = reference_forward(x2, params)
    assert out2.shape == (300, n_clusters)
    assert jnp.allclose(out2, ref2, atol=1e-2, rtol=1e-2)
    assert jnp.allclose(jnp.sum(out2, axis=1), 1.0, atol=1e-2)

    print("KERNEL_OK")
</pallas_src>

<mosaic_0001>
module attributes {stable_mosaic.version = 11 : i64} {
  func.func @clustering_kernel(%arg0: i32, %arg1: memref<64x128xbf16, #tpu.memory_space<vmem>>, %arg2: memref<128x256xbf16, #tpu.memory_space<vmem>>, %arg3: memref<1x256xf32, #tpu.memory_space<vmem>>, %arg4: memref<256x128xbf16, #tpu.memory_space<vmem>>, %arg5: memref<1x128xf32, #tpu.memory_space<vmem>>, %arg6: memref<128x128xbf16, #tpu.memory_space<vmem>>, %arg7: memref<1x128xf32, #tpu.memory_space<vmem>>, %arg8: memref<64x128xbf16, #tpu.memory_space<vmem>>) attributes {dimension_semantics = [#tpu.dimension_semantics<parallel>], iteration_bounds = array<i64: 1>, scalar_prefetch = 0 : i64, scratch_operands = 0 : i64, tpu.core_type = #tpu.core_type<tc>, window_params = [{transform_indices = @transform_0, window_bounds = array<i64: 64, 128>}, {pipeline_mode = #tpu.pipeline_mode<synchronous>, transform_indices = @transform_1, window_bounds = array<i64: 128, 256>}, {pipeline_mode = #tpu.pipeline_mode<synchronous>, transform_indices = @transform_2, window_bounds = array<i64: 1, 256>}, {pipeline_mode = #tpu.pipeline_mode<synchronous>, transform_indices = @transform_3, window_bounds = array<i64: 256, 128>}, {pipeline_mode = #tpu.pipeline_mode<synchronous>, transform_indices = @transform_4, window_bounds = array<i64: 1, 128>}, {pipeline_mode = #tpu.pipeline_mode<synchronous>, transform_indices = @transform_5, window_bounds = array<i64: 128, 128>}, {pipeline_mode = #tpu.pipeline_mode<synchronous>, transform_indices = @transform_6, window_bounds = array<i64: 1, 128>}, {transform_indices = @transform_7, window_bounds = array<i64: 64, 128>}]} {
    %c0 = arith.constant 0 : index
    %c0_0 = arith.constant 0 : index
    %0 = vector.load %arg3[%c0, %c0_0] : memref<1x256xf32, #tpu.memory_space<vmem>>, vector<1x256xf32>
    %c0_1 = arith.constant 0 : index
    %c0_2 = arith.constant 0 : index
    %1 = vector.load %arg5[%c0_1, %c0_2] : memref<1x128xf32, #tpu.memory_space<vmem>>, vector<1x128xf32>
    %c0_3 = arith.constant 0 : index
    %c0_4 = arith.constant 0 : index
    %2 = vector.load %arg7[%c0_3, %c0_4] : memref<1x128xf32, #tpu.memory_space<vmem>>, vector<1x128xf32>
    %c0_5 = arith.constant 0 : index
    %c0_6 = arith.constant 0 : index
    %3 = vector.load %arg1[%c0_5, %c0_6] : memref<64x128xbf16, #tpu.memory_space<vmem>>, vector<64x128xbf16>
    %c0_7 = arith.constant 0 : index
    %c0_8 = arith.constant 0 : index
    %4 = vector.load %arg2[%c0_7, %c0_8] : memref<128x256xbf16, #tpu.memory_space<vmem>>, vector<128x256xbf16>
    %cst = arith.constant dense<0.000000e+00> : vector<64x256xf32>
    %5 = tpu.matmul %3, %4, %cst {dimension_numbers = #tpu.dot_dimension_numbers<[1], [0], [0], [1], [0, 0, 1, 1], [], []>} : vector<64x128xbf16>, vector<128x256xbf16>, vector<64x256xf32> -> vector<64x256xf32>
    %6 = vector.broadcast %0 : vector<1x256xf32> to vector<64x256xf32>
    %7 = arith.addf %5, %6 : vector<64x256xf32>
    %cst_9 = arith.constant 0.000000e+00 : f32
    %8 = vector.broadcast %cst_9 : f32 to vector<64x256xf32>
    %9 = arith.maximumf %7, %8 : vector<64x256xf32>
    %10 = arith.truncf %9 : vector<64x256xf32> to vector<64x256xbf16>
    %c0_10 = arith.constant 0 : index
    %c0_11 = arith.constant 0 : index
    %11 = vector.load %arg4[%c0_10, %c0_11] : memref<256x128xbf16, #tpu.memory_space<vmem>>, vector<256x128xbf16>
    %cst_12 = arith.constant dense<0.000000e+00> : vector<64x128xf32>
    %12 = tpu.matmul %10, %11, %cst_12 {dimension_numbers = #tpu.dot_dimension_numbers<[1], [0], [0], [1], [0, 0, 1, 1], [], []>} : vector<64x256xbf16>, vector<256x128xbf16>, vector<64x128xf32> -> vector<64x128xf32>
    %13 = vector.broadcast %1 : vector<1x128xf32> to vector<64x128xf32>
    %14 = arith.addf %12, %13 : vector<64x128xf32>
    %cst_13 = arith.constant 0.000000e+00 : f32
    %15 = vector.broadcast %cst_13 : f32 to vector<64x128xf32>
    %16 = arith.maximumf %14, %15 : vector<64x128xf32>
    %17 = arith.truncf %16 : vector<64x128xf32> to vector<64x128xbf16>
    %c0_14 = arith.constant 0 : index
    %c0_15 = arith.constant 0 : index
    %18 = vector.load %arg6[%c0_14, %c0_15] : memref<128x128xbf16, #tpu.memory_space<vmem>>, vector<128x128xbf16>
    %cst_16 = arith.constant dense<0.000000e+00> : vector<64x128xf32>
    %19 = tpu.matmul %17, %18, %cst_16 {dimension_numbers = #tpu.dot_dimension_numbers<[1], [0], [0], [1], [0, 0, 1, 1], [], []>} : vector<64x128xbf16>, vector<128x128xbf16>, vector<64x128xf32> -> vector<64x128xf32>
    %20 = vector.broadcast %2 : vector<1x128xf32> to vector<64x128xf32>
    %21 = arith.addf %19, %20 : vector<64x128xf32>
    %cst_17 = arith.constant dense<0xFF800000> : vector<64xf32>
    %22 = vector.multi_reduction <maximumf>, %21, %cst_17 [1] : vector<64x128xf32> to vector<64xf32>
    %23 = vector.shape_cast %22 : vector<64xf32> to vector<64x1xf32>
    %24 = vector.broadcast %23 : vector<64x1xf32> to vector<64x128xf32>
    %25 = arith.subf %21, %24 : vector<64x128xf32>
    %26 = math.exp %25 : vector<64x128xf32>
    %cst_18 = arith.constant dense<0.000000e+00> : vector<64xf32>
    %27 = vector.multi_reduction <add>, %26, %cst_18 [1] : vector<64x128xf32> to vector<64xf32>
    %28 = vector.shape_cast %27 : vector<64xf32> to vector<64x1xf32>
    %29 = tpu.reciprocal %28 {approx = true} : vector<64x1xf32> -> vector<64x1xf32>
    %30 = arith.mulf %28, %29 : vector<64x1xf32>
    %cst_19 = arith.constant 2.000000e+00 : f32
    %31 = vector.broadcast %cst_19 : f32 to vector<64x1xf32>
    %32 = arith.subf %31, %30 : vector<64x1xf32>
    %33 = arith.mulf %29, %32 : vector<64x1xf32>
    %34 = vector.broadcast %33 : vector<64x1xf32> to vector<64x128xf32>
    %35 = arith.mulf %26, %34 : vector<64x128xf32>
    %36 = arith.truncf %35 : vector<64x128xf32> to vector<64x128xbf16>
    %c0_20 = arith.constant 0 : index
    %c0_21 = arith.constant 0 : index
    %37 = vector.load %arg8[%c0_20, %c0_21] : memref<64x128xbf16, #tpu.memory_space<vmem>>, vector<64x128xbf16>
    tpu.vector_store %arg8[%c0_20, %c0_21], %36 {strides = array<i32>} : memref<64x128xbf16, #tpu.memory_space<vmem>>, vector<64x128xbf16>,
    return
  }
  func.func @transform_0(%arg0: i32) -> (i32, i32) {
    %c0_i32 = arith.constant 0 : i32
    %c0_i32_0 = arith.constant 0 : i32
    return %arg0, %c0_i32 : i32, i32
  }
  func.func @transform_1(%arg0: i32) -> (i32, i32) {
    %c0_i32 = arith.constant 0 : i32
    %c0_i32_0 = arith.constant 0 : i32
    %c0_i32_1 = arith.constant 0 : i32
    return %c0_i32, %c0_i32_0 : i32, i32
  }
  func.func @transform_2(%arg0: i32) -> (i32, i32) {
    %c0_i32 = arith.constant 0 : i32
    %c0_i32_0 = arith.constant 0 : i32
    %c0_i32_1 = arith.constant 0 : i32
    return %c0_i32, %c0_i32_0 : i32, i32
  }
  func.func @transform_3(%arg0: i32) -> (i32, i32) {
    %c0_i32 = arith.constant 0 : i32
    %c0_i32_0 = arith.constant 0 : i32
    %c0_i32_1 = arith.constant 0 : i32
    return %c0_i32, %c0_i32_0 : i32, i32
  }
  func.func @transform_4(%arg0: i32) -> (i32, i32) {
    %c0_i32 = arith.constant 0 : i32
    %c0_i32_0 = arith.constant 0 : i32
    %c0_i32_1 = arith.constant 0 : i32
    return %c0_i32, %c0_i32_0 : i32, i32
  }
  func.func @transform_5(%arg0: i32) -> (i32, i32) {
    %c0_i32 = arith.constant 0 : i32
    %c0_i32_0 = arith.constant 0 : i32
    %c0_i32_1 = arith.constant 0 : i32
    return %c0_i32, %c0_i32_0 : i32, i32
  }
  func.func @transform_6(%arg0: i32) -> (i32, i32) {
    %c0_i32 = arith.constant 0 : i32
    %c0_i32_0 = arith.constant 0 : i32
    %c0_i32_1 = arith.constant 0 : i32
    return %c0_i32, %c0_i32_0 : i32, i32
  }
  func.func @transform_7(%arg0: i32) -> (i32, i32) {
    %c0_i32 = arith.constant 0 : i32
    %c0_i32_0 = arith.constant 0 : i32
    return %arg0, %c0_i32 : i32, i32
  }
}

</mosaic_0001>

<bundles_post_ra>
// kernel: tpu_custom_call.1
= control target key start
LH: loop header
LB: loop body
LE: loop exit
PB: predicated region body
PF: predicated region fallthrough
CT: control target
= control target key end

     0   :  { %12 = vsyncpa [#allocation3], 0  ;;  %s1366_s0 = inlined_call_operand.hbm [shape: bf16[64,128], index: 0, kind: input, shape index: {}]   ;;  %s1367_s1 = inlined_call_operand.hbm [shape: bf16[128,256], index: 1, kind: input, shape index: {}]   ;;  %s1368_s2 = inlined_call_operand.vmem [shape: f32[1,256], index: 2, kind: input, shape index: {}]   ;;  %s1369_s3 = inlined_call_operand.hbm [shape: bf16[256,128], index: 3, kind: input, shape index: {}]   ;;  %s1370_s4 = inlined_call_operand.vmem [shape: f32[1,128], index: 4, kind: input, shape index: {}]   ;;  %s1371_s5 = inlined_call_operand.hbm [shape: bf16[128,128], index: 5, kind: input, shape index: {}]   ;;  %s1372_s6 = inlined_call_operand.vmem [shape: f32[1,128], index: 6, kind: input, shape index: {}]   ;;  %s1373_s7 = inlined_call_operand.hbm [shape: bf16[64,128], index: 7, kind: output, shape index: {}]  }
   0x1   :  { %13 = vsyncpa [#allocation6], 0 }
   0x2   :  { %14 = vsyncpa [#allocation9], 0 }
   0x3   :  { %15 = vsyncpa [#allocation4], 0  ;;  %s1212_s24 = smov [#allocation5]   ;;  %s1094_s28 = scalar_lea.hbm %s1367_s1, 2048 }
   0x4   :  { %s33_s25 = sshll.u32 %s1212_s24, 4  ;;  %p1095_p0 = scmp.ne.s32.totalorder %s1367_s1, %s1094_s28  ;;  %s34_s25 = int_to_ptr.vmem [resolvable:$true] %s33_s25 }
   0x5   :  { %p1098_p1 = scmp.lt.u32.totalorder %s1094_s28, %s1367_s1 }
   0x7   :  { %p1100_p2 = pnand %p1098_p1, %p1095_p0 }
   0x9   :  { %1103 = shalt.err (!%p1100_p2)
}
   0xa   :  { %s1104_s10 = scalar_lea.vmem %s34_s25, 2048  ;;  %p1109_p4 = scmp.lt.s32.totalorder %s34_s25, %s34_s25 }
   0xb   :  { %p1105_p3 = scmp.ne.s32.totalorder %s34_s25, %s1104_s10  ;;  %p1110_p5 = scmp.lt.s32.totalorder %s1104_s10, %s1104_s10 }
   0xd   :  { %p1111_p6 = por %p1110_p5, %p1109_p4 }
   0xf   :  { %p1112_p7 = pnand %p1111_p6, %p1105_p3 }
  0x11   :  { %1115 = shalt.err (!%p1112_p7)
}
  0x12   :  { %s1213_s11 = smov 128   ;;  %s1214_s12 = smov 8  }
  0x13   :  { %39 = dma.hbm_to_vmem [thread:$0]  %s1367_s1, 2048, %s34_s25, [#allocation6], %s1213_s11, %s1213_s11, %s1214_s12  }
  0x14   :  { %s1215_s15 = smov [#allocation2]   ;;  %s1116_s19 = scalar_lea.hbm %s1366_s0, 512 }
  0x15   :  { %s21_s16 = sshll.u32 %s1215_s15, 4  ;;  %p1117_p8 = scmp.ne.s32.totalorder %s1366_s0, %s1116_s19  ;;  %s22_s16 = int_to_ptr.vmem [resolvable:$true] %s21_s16 }
  0x16   :  { %p1120_p9 = scmp.lt.u32.totalorder %s1116_s19, %s1366_s0 }
  0x18   :  { %p1122_p10 = pnand %p1120_p9, %p1117_p8 }
  0x1a   :  { %1125 = shalt.err (!%p1122_p10)
}
  0x1b   :  { %s1126_s24 = scalar_lea.vmem %s22_s16, 512  ;;  %p1131_p12 = scmp.lt.s32.totalorder %s22_s16, %s22_s16 }
  0x1c   :  { %p1127_p11 = scmp.ne.s32.totalorder %s22_s16, %s1126_s24  ;;  %p1132_p13 = scmp.lt.s32.totalorder %s1126_s24, %s1126_s24 }
  0x1e   :  { %p1133_p0 = por %p1132_p13, %p1131_p12 }
  0x20   :  { %p1134_p1 = pnand %p1133_p0, %p1127_p11 }
  0x22   :  { %1137 = shalt.err (!%p1134_p1)
}
  0x23   :  { %s1216_s1 = smov 64   ;;  %s1217_s25 = smov 4  }
  0x24   :  { %27 = dma.hbm_to_vmem [thread:$0]  %s1366_s0, 512, %s22_s16, [#allocation3], %s1216_s1, %s1216_s1, %s1217_s25  }
  0x25   :  { %s1218_s28 = smov [#allocation7]   ;;  %s1219_s30 = smov [#allocation8]  }
  0x26   :  { %s47_s29 = sshll.u32 %s1218_s28, 4  ;;  %s61_s8 = sshll.u32 %s1219_s30, 4  ;;  %s48_s29 = int_to_ptr.vmem [resolvable:$true] %s47_s29  ;;  %s1289_s8 = int_to_ptr.vmem [resolvable:$true] %s61_s8 }
  0x27   :  { %s1138_s11 = scalar_lea.hbm %s1369_s3, 2048 }
  0x28   :  { %p1139_p2 = scmp.ne.s32.totalorder %s1369_s3, %s1138_s11  ;;  %p1142_p3 = scmp.lt.u32.totalorder %s1138_s11, %s1369_s3 }
  0x2a   :  { %p1144_p4 = pnand %p1142_p3, %p1139_p2 }
  0x2c   :  { %1147 = shalt.err (!%p1144_p4)
}
  0x2d   :  { %s1148_s0 = scalar_lea.vmem %s48_s29, 2048  ;;  %p1153_p6 = scmp.lt.s32.totalorder %s48_s29, %s48_s29 }
  0x2e   :  { %p1149_p5 = scmp.ne.s32.totalorder %s48_s29, %s1148_s0  ;;  %p1154_p7 = scmp.lt.s32.totalorder %s1148_s0, %s1148_s0 }
  0x30   :  { %p1155_p8 = por %p1154_p7, %p1153_p6 }
  0x32   :  { %p1156_p9 = pnand %p1155_p8, %p1149_p5 }
  0x34   :  { %1159 = shalt.err (!%p1156_p9)
}
  0x35   :  { %53 = dma.hbm_to_vmem [thread:$0]  %s1369_s3, 2048, %s48_s29, [#allocation6], %s1216_s1, %s1216_s1, %s1217_s25  }
  0x36   :  { %s1160_s20 = scalar_lea.hbm %s1371_s5, 1024 }
  0x37   :  { %p1161_p10 = scmp.ne.s32.totalorder %s1371_s5, %s1160_s20  ;;  %p1164_p11 = scmp.lt.u32.totalorder %s1160_s20, %s1371_s5 }
  0x39   :  { %p1166_p12 = pnand %p1164_p11, %p1161_p10 }
  0x3b   :  { %1169 = shalt.err (!%p1166_p12)
}
  0x3c   :  { %s1170_s26 = scalar_lea.vmem %s1289_s8, 1024  ;;  %p1175_p0 = scmp.lt.s32.totalorder %s1289_s8, %s1289_s8 }
  0x3d   :  { %p1171_p13 = scmp.ne.s32.totalorder %s1289_s8, %s1170_s26  ;;  %p1176_p1 = scmp.lt.s32.totalorder %s1170_s26, %s1170_s26 }
  0x3f   :  { %p1177_p2 = por %p1176_p1, %p1175_p0 }
  0x41   :  { %p1178_p3 = pnand %p1177_p2, %p1171_p13 }
  0x43   :  { %1181 = shalt.err (!%p1178_p3)
}
  0x44   :  { %67 = dma.hbm_to_vmem [thread:$0]  %s1371_s5, 1024, %s1289_s8, [#allocation9], %s1216_s1, %s1216_s1, %s1217_s25  }
  0x45   :  { %1204 = dma.done.wait [#allocation3], 512  }
  0x46   :  { %1205 = vsyncadd [#allocation3], 4294966784 }
  0x47   :  { %1206 = dma.done.wait [#allocation6], 4096  }
  0x48   :  { %1207 = vsyncadd [#allocation6], 4294963200 }
  0x49   :  { %1208 = dma.done.wait [#allocation9], 1024  }
  0x4a   :  { %1209 = vsyncadd [#allocation9], 4294966272  ;;  %v1220_v0 = vmov 0   ;;  %v1010_v1 = vld [vmem:[#allocation5 + $0x4] ss:$8 sps:$4 sm:$0xff]   ;;  %v1042_v17 = vld [vmem:[#allocation7 + $0x50] sm:$0xff]   ;;  %v111_v40 = vlaneseq }
  0x4b   :  { %257 = vmatprep.mubr.bf16.mxu0 %v1220_v0  ;;  %v1012_v2 = vld [vmem:[#allocation5] ss:$8 sps:$4 sm:$0xff]   ;;  %225 = vmatprep.subr.bf16.mxu0 %v1010_v1  ;;  %v1013_v3 = vld [vmem:[#allocation5 + $0x14] ss:$8 sps:$4 sm:$0xff]   ;;  %v1015_v4 = vld [vmem:[#allocation5 + $0x10] ss:$8 sps:$4 sm:$0xff]  }
  0x4c   :  { %226 = vmatpush1.bf16.msra.mxu0 %v1012_v2  ;;  %v1016_v5 = vld [vmem:[#allocation5 + $0x24] ss:$8 sps:$4 sm:$0xff]   ;;  %v1018_v6 = vld [vmem:[#allocation5 + $0x20] ss:$8 sps:$4 sm:$0xff]   ;;  %v1019_v7 = vld [vmem:[#allocation5 + $0x34] ss:$8 sps:$4 sm:$0xff]  }
  0x4d   :  { %227 = vmatprep.subr.bf16.mxu0 %v1013_v3  ;;  %v1021_v8 = vld [vmem:[#allocation5 + $0x30] ss:$8 sps:$4 sm:$0xff]   ;;  %v1022_v9 = vld [vmem:[#allocation5 + $0x44] ss:$8 sps:$4 sm:$0xff]   ;;  %v1024_v10 = vld [vmem:[#allocation5 + $0x40] ss:$8 sps:$4 sm:$0xff]  }
  0x4e   :  { %v1025_v11 = vld [vmem:[#allocation5 + $0x54] ss:$8 sps:$4 sm:$0xff]   ;;  %v1038_v12 = vld [vmem:[#allocation7 + $0x40] sm:$0xff]   ;;  %v1027_v14 = vld [vmem:[#allocation5 + $0x50] ss:$8 sps:$4 sm:$0xff]   ;;  %v112_v41 = vshrl.u32 %v111_v40, 7 }
  0x4f   :  { %v1039_v13 = vld [vmem:[#allocation7] sm:$0xff]   ;;  %908 = vmatprep.subr.bf16.mxu1 %v1038_v12  ;;  %v1040_v15 = vld [vmem:[#allocation7 + $0x48] sm:$0xff]   ;;  %v1043_v20 = vld [vmem:[#allocation7 + $0x10] sm:$0xff]  }
  0x50   :  { %228 = vmatpush1.bf16.msra.mxu0 %v1015_v4  ;;  %909 = vmatpush3.bf16.msra.mxu1 %v1039_v13  ;;  %v1041_v16 = vld [vmem:[#allocation7 + $0x8] sm:$0xff]   ;;  %v1044_v21 = vld [vmem:[#allocation7 + $0x58] sm:$0xff]   ;;  %v1046_v25 = vld [vmem:[#allocation7 + $0x60] sm:$0xff]   ;;  %v113_v42 = vsub.s32 0, %v112_v41  ;;  %v117_v44 = vsub.s32 1, %v112_v41 }
  0x51   :  { %229 = vmatprep.subr.bf16.mxu0 %v1016_v5  ;;  %910 = vmatprep.subr.bf16.mxu1 %v1040_v15  ;;  %v1028_v18 = vld [vmem:[#allocation5 + $0x64] ss:$8 sps:$4 sm:$0xff]   ;;  %v1030_v19 = vld [vmem:[#allocation5 + $0x60] ss:$8 sps:$4 sm:$0xff]   ;;  %v1031_v22 = vld [vmem:[#allocation5 + $0x74] ss:$8 sps:$4 sm:$0xff]  }
  0x52   :  { %v1033_v23 = vld [vmem:[#allocation5 + $0x70] ss:$8 sps:$4 sm:$0xff]   ;;  %v1034_v26 = vld [vmem:[#allocation2] sm:$0xff]   ;;  %v1048_v28 = vld [vmem:[#allocation7 + $0x68] sm:$0xff]  }
  0x53   :  { %v1045_v24 = vld [vmem:[#allocation7 + $0x18] sm:$0xff]   ;;  %v1047_v27 = vld [vmem:[#allocation7 + $0x20] sm:$0xff]   ;;  %v1035_v29 = vld [vmem:[#allocation2 + $0x8] sm:$0xff]  }
  0x54   :  { %230 = vmatpush1.bf16.msra.mxu0 %v1018_v6  ;;  %911 = vmatpush3.bf16.msra.mxu1 %v1041_v16  ;;  %v1036_v30 = vld [vmem:[#allocation2 + $0x10] sm:$0xff]   ;;  %v1037_v31 = vld [vmem:[#allocation2 + $0x18] sm:$0xff]   ;;  %v1049_v32 = vld [vmem:[#allocation7 + $0x28] sm:$0xff]  }
  0x55   :  { %231 = vmatprep.subr.bf16.mxu0 %v1019_v7  ;;  %912 = vmatprep.subr.bf16.mxu1 %v1042_v17  ;;  %v1050_v33 = vld [vmem:[#allocation7 + $0x70] sm:$0xff]   ;;  %v1052_v35 = vld [vmem:[#allocation7 + $0x78] sm:$0xff]   ;;  %v1054_v37 = vld [vmem:[#allocation8] sm:$0xff]  }
  0x56   :  { %v1051_v34 = vld [vmem:[#allocation7 + $0x30] sm:$0xff]   ;;  %v1053_v36 = vld [vmem:[#allocation7 + $0x38] sm:$0xff]   ;;  %v1055_v38 = vld [vmem:[#allocation8 + $0x8] sm:$0xff]  }
  0x57   :  { %v1056_v39 = vld [vmem:[#allocation8 + $0x10] sm:$0xff]   ;;  %v83_v43 = vld [vmem:[%s1368_s2] sm:$0x3]  ;;  %v1059_v41 = vld [vmem:[#allocation8 + $0x28] sm:$0xff]  }
  0x58   :  { %232 = vmatpush1.bf16.msra.mxu0 %v1021_v8  ;;  %913 = vmatpush3.bf16.msra.mxu1 %v1043_v20  ;;  %v114_v45 = vrot.slane %v83_v43, %v113_v42  ;;  %v118_v46 = vrot.slane %v83_v43, %v117_v44  ;;  %v1058_v40 = vld [vmem:[#allocation8 + $0x20] sm:$0xff]   ;;  %v1060_v42 = vld [vmem:[#allocation8 + $0x30] sm:$0xff]   ;;  %v1061_v43 = vld [vmem:[#allocation8 + $0x38] sm:$0xff]  }
  0x59   :  { %233 = vmatprep.subr.bf16.mxu0 %v1022_v9  ;;  %914 = vmatprep.subr.bf16.mxu1 %v1044_v21 }
  0x5c   :  { %234 = vmatpush1.bf16.msra.mxu0 %v1024_v10  ;;  %915 = vmatpush3.bf16.msra.mxu1 %v1045_v24 }
  0x5d   :  { %235 = vmatprep.subr.bf16.mxu0 %v1025_v11  ;;  %916 = vmatprep.subr.bf16.mxu1 %v1046_v25 }
  0x60   :  { %236 = vmatpush1.bf16.msra.mxu0 %v1027_v14  ;;  %917 = vmatpush3.bf16.msra.mxu1 %v1047_v27 }
  0x61   :  { %237 = vmatprep.subr.bf16.mxu0 %v1028_v18  ;;  %918 = vmatprep.subr.bf16.mxu1 %v1048_v28 }
  0x64   :  { %238 = vmatpush1.bf16.msra.mxu0 %v1030_v19  ;;  %919 = vmatpush3.bf16.msra.mxu1 %v1049_v32 }
  0x65   :  { %239 = vmatprep.subr.bf16.mxu0 %v1031_v22  ;;  %920 = vmatprep.subr.bf16.mxu1 %v1050_v33 }
  0x68   :  { %240 = vmatpush1.bf16.msra.mxu0 %v1033_v23  ;;  %921 = vmatpush3.bf16.msra.mxu1 %v1051_v34 }
  0x69   :  { %922 = vmatprep.subr.bf16.mxu1 %v1052_v35  ;;  %960 = vmatprep.subr.bf16.mxu0 %v1054_v37 }
  0x6b   :  { %258 = vmatmul.mubr.bf16.vlgmr.msra.gmra.mrb[0].mxu0 %v1034_v26 }
  0x6c   :  { %267 = vmatprep.mubr.bf16.mxu0 %v1220_v0  ;;  %923 = vmatpush3.bf16.msra.mxu1 %v1053_v36 }
  0x6d   :  { %984 = vmatprep.subr.bf16.mxu1 %v1054_v37  ;;  %961 = vmatpush3.bf16.msra.mxu0 %v1054_v37 }
  0x6e   :  { %962 = vmatprep.subr.bf16.mxu0 %v1055_v38 }
  0x71   :  { %963 = vmatpush3.bf16.msra.mxu0 %v1055_v38 }
  0x72   :  { %964 = vmatprep.subr.bf16.mxu0 %v1056_v39 }
  0x73   :  { %268 = vmatmul.mubr.bf16.gmra.mrb[4].mxu0 %v1035_v29 }
  0x74   :  { %277 = vmatprep.mubr.bf16.mxu0 %v1220_v0 }
  0x75   :  { %965 = vmatpush3.bf16.msra.mxu0 %v1056_v39 }
  0x7b   :  { %278 = vmatmul.mubr.bf16.gmra.mrb[8].mxu0 %v1036_v30 }
  0x7c   :  { %287 = vmatprep.mubr.bf16.mxu0 %v1220_v0 }
  0x83   :  { %288 = vmatmul.mubr.bf16.gmra.mrb[12].mxu0 %v1037_v31 }
 0x13e   :  { %v259_v47 = vpop.f32.mrb[0].mxu0 }
 0x13f   :  { %v260_v48 = vadd.f32 %v259_v47, %v114_v45  ;;  %v261_v49 = vpop.f32.mrb[1].mxu0 }
 0x140   :  { %v262_v50 = vadd.f32 %v261_v49, %v118_v46  ;;  %v263_v51 = vpop.f32.mrb[2].mxu0 }
 0x141   :  { %v264_v52 = vadd.f32 %v263_v51, %v114_v45  ;;  %v265_v53 = vpop.f32.mrb[3].mxu0  ;;  %v298_v55 = vmax.f32 %v260_v48, 0.0 }
 0x142   :  { %v266_v54 = vadd.f32 %v265_v53, %v118_v46  ;;  %v299_v57 = vmax.f32 %v262_v50, 0.0 }
 0x143   :  { %v300_v56 = vmax.f32 %v264_v52, 0.0 }
 0x144   :  { %v301_v58 = vmax.f32 %v266_v54, 0.0 }
 0x145   :  { %v314_v59 = vpack.c.bf16 %v300_v56, %v298_v55 }
 0x146   :  { %v269_v60 = vpop.f32.mrb[4].mxu0  ;;  %v315_v61 = vpack.c.bf16 %v301_v58, %v299_v57 }
 0x147   :  { %v270_v62 = vadd.f32 %v269_v60, %v114_v45  ;;  %v271_v63 = vpop.f32.mrb[5].mxu0 }
 0x148   :  { %v272_v0 = vadd.f32 %v271_v63, %v118_v46  ;;  %v273_v1 = vpop.f32.mrb[6].mxu0  ;;  %488 = vmatprep.mubr.bf16.mxu1 %v315_v61 }
 0x149   :  { %v274_v2 = vadd.f32 %v273_v1, %v114_v45  ;;  %v275_v3 = vpop.f32.mrb[7].mxu0  ;;  %489 = vmatmul.mubr.bf16.vlgmr.msra.gmra.mrb[0].mxu1 %v314_v59  ;;  %v302_v5 = vmax.f32 %v270_v62, 0.0 }
 0x14a   :  { %v276_v4 = vadd.f32 %v275_v3, %v118_v46  ;;  %992 = vmatpush3.bf16.msra.mxu1 %v1054_v37  ;;  %v303_v7 = vmax.f32 %v272_v0, 0.0 }
 0x14b   :  { %v304_v6 = vmax.f32 %v274_v2, 0.0  ;;  %985 = vmatprep.subr.bf16.mxu1 %v1055_v38 }
 0x14c   :  { %v305_v8 = vmax.f32 %v276_v4, 0.0 }
 0x14d   :  { %v316_v9 = vpack.c.bf16 %v304_v6, %v302_v5 }
 0x14e   :  { %v317_v10 = vpack.c.bf16 %v305_v8, %v303_v7  ;;  %v279_v11 = vpop.f32.mrb[8].mxu0  ;;  %993 = vmatpush3.bf16.msra.mxu1 %v1055_v38 }
 0x14f   :  { %v280_v12 = vadd.f32 %v279_v11, %v114_v45  ;;  %v281_v13 = vpop.f32.mrb[9].mxu0  ;;  %986 = vmatprep.subr.bf16.mxu1 %v1056_v39 }
 0x150   :  { %v282_v14 = vadd.f32 %v281_v13, %v118_v46  ;;  %v283_v15 = vpop.f32.mrb[10].mxu0  ;;  %496 = vmatprep.mubr.bf16.mxu1 %v317_v10 }
 0x151   :  { %v284_v16 = vadd.f32 %v283_v15, %v114_v45  ;;  %v285_v17 = vpop.f32.mrb[11].mxu0  ;;  %497 = vmatmul.mubr.bf16.gmra.mrb[4].mxu1 %v316_v9  ;;  %v306_v19 = vmax.f32 %v280_v12, 0.0 }
 0x152   :  { %v286_v18 = vadd.f32 %v285_v17, %v118_v46  ;;  %994 = vmatpush3.bf16.msra.mxu1 %v1056_v39  ;;  %v307_v21 = vmax.f32 %v282_v14, 0.0  ;;  %v1057_v39 = vld [vmem:[#allocation8 + $0x18] sm:$0xff]  }
 0x153   :  { %v308_v20 = vmax.f32 %v284_v16, 0.0  ;;  %966 = vmatprep.subr.bf16.mxu0 %v1057_v39  ;;  %987 = vmatprep.subr.bf16.mxu1 %v1057_v39 }
 0x154   :  { %v309_v22 = vmax.f32 %v286_v18, 0.0  ;;  %967 = vmatpush3.bf16.msra.mxu0 %v1057_v39 }
 0x155   :  { %v318_v23 = vpack.c.bf16 %v308_v20, %v306_v19  ;;  %968 = vmatprep.subr.bf16.mxu0 %v1058_v40 }
 0x156   :  { %v319_v24 = vpack.c.bf16 %v309_v22, %v307_v21  ;;  %v289_v25 = vpop.f32.mrb[12].mxu0  ;;  %995 = vmatpush3.bf16.msra.mxu1 %v1057_v39 }
 0x157   :  { %v290_v26 = vadd.f32 %v289_v25, %v114_v45  ;;  %v291_v27 = vpop.f32.mrb[13].mxu0  ;;  %988 = vmatprep.subr.bf16.mxu1 %v1058_v40  ;;  %v860_v25 = vld [vmem:[%s1372_s6] ss:$0 sm:$0xff]  ;;  %s1221_s6 = smov [#allocation10]  }
 0x158   :  { %v292_v28 = vadd.f32 %v291_v27, %v118_v46  ;;  %v293_v29 = vpop.f32.mrb[14].mxu0  ;;  %504 = vmatprep.mubr.bf16.mxu1 %v319_v24  ;;  %969 = vmatpush3.bf16.msra.mxu0 %v1058_v40  ;;  %s809_s8 = sshll.u32 %s1221_s6, 4  ;;  %s810_s8 = int_to_ptr.vmem [resolvable:$true] %s809_s8 }
 0x159   :  { %v294_v30 = vadd.f32 %v293_v29, %v114_v45  ;;  %v295_v31 = vpop.f32.mrb[15].mxu0  ;;  %505 = vmatmul.mubr.bf16.gmra.mrb[8].mxu1 %v318_v23  ;;  %v310_v33 = vmax.f32 %v290_v26, 0.0  ;;  %970 = vmatprep.subr.bf16.mxu0 %v1059_v41  ;;  %v843_v45 = vld [vmem:[%s1370_s4] ss:$0 sm:$0xff]  ;;  %s1182_s9 = scalar_lea.vmem %s810_s8, 512  ;;  %p1187_p5 = scmp.lt.s32.totalorder %s810_s8, %s810_s8 }
 0x15a   :  { %v296_v32 = vadd.f32 %v295_v31, %v118_v46  ;;  %v311_v35 = vmax.f32 %v292_v28, 0.0  ;;  %996 = vmatpush3.bf16.msra.mxu1 %v1058_v40  ;;  %p1183_p4 = scmp.ne.s32.totalorder %s810_s8, %s1182_s9  ;;  %p1188_p6 = scmp.lt.s32.totalorder %s1182_s9, %s1182_s9 }
 0x15b   :  { %v312_v34 = vmax.f32 %v294_v30, 0.0  ;;  %989 = vmatprep.subr.bf16.mxu1 %v1059_v41 }
 0x15c   :  { %v313_v36 = vmax.f32 %v296_v32, 0.0  ;;  %971 = vmatpush3.bf16.msra.mxu0 %v1059_v41  ;;  %p1189_p7 = por %p1188_p6, %p1187_p5 }
 0x15d   :  { %v320_v37 = vpack.c.bf16 %v312_v34, %v310_v33  ;;  %972 = vmatprep.subr.bf16.mxu0 %v1060_v42 }
 0x15e   :  { %v321_v38 = vpack.c.bf16 %v313_v36, %v311_v35  ;;  %997 = vmatpush3.bf16.msra.mxu1 %v1059_v41  ;;  %p1190_p8 = pnand %p1189_p7, %p1183_p4 }
 0x15f   :  { %990 = vmatprep.subr.bf16.mxu1 %v1060_v42 }
 0x160   :  { %512 = vmatprep.mubr.bf16.mxu1 %v321_v38  ;;  %973 = vmatpush3.bf16.msra.mxu0 %v1060_v42 }
 0x161   :  { %513 = vmatmul.mubr.bf16.gmra.mrb[12].mxu1 %v320_v37  ;;  %974 = vmatprep.subr.bf16.mxu0 %v1061_v43 }
 0x162   :  { %998 = vmatpush3.bf16.msra.mxu1 %v1060_v42 }
 0x163   :  { %991 = vmatprep.subr.bf16.mxu1 %v1061_v43 }
 0x164   :  { %975 = vmatpush3.bf16.msra.mxu0 %v1061_v43 }
 0x166   :  { %999 = vmatpush3.bf16.msra.mxu1 %v1061_v43 }
 0x21c   :  { %v924_v44 = vpop.f32.mrb[0].mxu1 }
 0x21d   :  { %v925_v46 = vpop.f32.mrb[1].mxu1 }
 0x21e   :  { %v926_v47 = vadd.f32 %v925_v46, %v924_v44  ;;  %v927_v48 = vpop.f32.mrb[2].mxu1 }
 0x21f   :  { %v928_v49 = vpop.f32.mrb[3].mxu1 }
 0x220   :  { %v491_v50 = vadd.f32 %v926_v47, %v843_v45  ;;  %v929_v51 = vadd.f32 %v928_v49, %v927_v48 }
 0x222   :  { %v494_v52 = vadd.f32 %v929_v51, %v843_v45  ;;  %v521_v53 = vmax.f32 %v491_v50, 0.0 }
 0x224   :  { %v522_v54 = vmax.f32 %v494_v52, 0.0  ;;  %v930_v55 = vpop.f32.mrb[4].mxu1 }
 0x225   :  { %v931_v56 = vpop.f32.mrb[5].mxu1 }
 0x226   :  { %v932_v57 = vadd.f32 %v931_v56, %v930_v55  ;;  %v933_v58 = vpop.f32.mrb[6].mxu1  ;;  %v529_v59 = vpack.c.bf16 %v522_v54, %v521_v53 }
 0x227   :  { %v934_v60 = vpop.f32.mrb[7].mxu1 }
 0x228   :  { %v499_v61 = vadd.f32 %v932_v57, %v843_v45  ;;  %v935_v62 = vadd.f32 %v934_v60, %v933_v58  ;;  %976 = vmatprep.mubr.bf16.mxu0 %v529_v59 }
 0x22a   :  { %v502_v63 = vadd.f32 %v935_v62, %v843_v45  ;;  %v523_v0 = vmax.f32 %v499_v61, 0.0 }
 0x22c   :  { %v524_v1 = vmax.f32 %v502_v63, 0.0  ;;  %v936_v2 = vpop.f32.mrb[8].mxu1 }
 0x22d   :  { %v937_v3 = vpop.f32.mrb[9].mxu1 }
 0x22e   :  { %v530_v4 = vpack.c.bf16 %v524_v1, %v523_v0  ;;  %v938_v5 = vadd.f32 %v937_v3, %v936_v2  ;;  %v939_v6 = vpop.f32.mrb[10].mxu1 }
 0x22f   :  { %v940_v7 = vpop.f32.mrb[11].mxu1 }
 0x230   :  { %v507_v8 = vadd.f32 %v938_v5, %v843_v45  ;;  %v941_v9 = vadd.f32 %v940_v7, %v939_v6  ;;  %977 = vmatmul.mubr.bf16.vlgmr.msra.gmra.mrb[16].mxu0 %v530_v4 }
 0x232   :  { %v510_v10 = vadd.f32 %v941_v9, %v843_v45  ;;  %v525_v11 = vmax.f32 %v507_v8, 0.0 }
 0x234   :  { %v526_v12 = vmax.f32 %v510_v10, 0.0  ;;  %v942_v13 = vpop.f32.mrb[12].mxu1 }
 0x235   :  { %v943_v14 = vpop.f32.mrb[13].mxu1 }
 0x236   :  { %v944_v15 = vadd.f32 %v943_v14, %v942_v13  ;;  %v945_v16 = vpop.f32.mrb[14].mxu1  ;;  %v531_v17 = vpack.c.bf16 %v526_v12, %v525_v11 }
 0x237   :  { %v946_v18 = vpop.f32.mrb[15].mxu1 }
 0x238   :  { %v515_v19 = vadd.f32 %v944_v15, %v843_v45  ;;  %v947_v20 = vadd.f32 %v946_v18, %v945_v16  ;;  %980 = vmatprep.mubr.bf16.mxu1 %v531_v17 }
 0x23a   :  { %v518_v21 = vadd.f32 %v947_v20, %v843_v45  ;;  %v527_v22 = vmax.f32 %v515_v19, 0.0 }
 0x23c   :  { %v528_v23 = vmax.f32 %v518_v21, 0.0 }
 0x23e   :  { %v532_v24 = vpack.c.bf16 %v528_v23, %v527_v22 }
 0x240   :  { %981 = vmatmul.mubr.bf16.vlgmr.msra.gmra.mrb[16].mxu1 %v532_v24 }
 0x303   :  { %v978_v26 = vpop.f32.mrb[16].mxu0 }
 0x304   :  { %v646_v27 = vadd.f32 %v978_v26, %v860_v25  ;;  %v637_v28 = vpop.f32.mrb[17].mxu0 }
 0x305   :  { %v638_v29 = vadd.f32 %v860_v25, %v637_v28  ;;  %v979_v30 = vpop.f32.mrb[18].mxu0 }
 0x306   :  { %672 = vmax.xlane.f32.xlu1 %v646_v27  ;;  %v640_v31 = vpop.f32.mrb[19].mxu0  ;;  %v649_v32 = vadd.f32 %v979_v30, %v860_v25 }
 0x307   :  { %668 = vmax.xlane.f32.xlu0 %v638_v29  ;;  %v641_v33 = vadd.f32 %v860_v25, %v640_v31 }
 0x30a   :  { %674 = vmax.xlane.f32.xlu1 %v649_v32 }
 0x30b   :  { %670 = vmax.xlane.f32.xlu0 %v641_v33 }
 0x313   :  { %v982_v34 = vpop.f32.mrb[16].mxu1 }
 0x314   :  { %v653_v35 = vpop.f32.mrb[17].mxu1  ;;  %v662_v40 = vadd.f32 %v982_v34, %v860_v25 }
 0x315   :  { %v654_v36 = vadd.f32 %v860_v25, %v653_v35  ;;  %v983_v37 = vpop.f32.mrb[18].mxu1 }
 0x316   :  { %v656_v38 = vpop.f32.mrb[19].mxu1  ;;  %v665_v41 = vadd.f32 %v983_v37, %v860_v25 }
 0x317   :  { %v657_v39 = vadd.f32 %v860_v25, %v656_v38  ;;  %676 = vmax.xlane.f32.xlu0 %v654_v36 }
 0x319   :  { %678 = vmax.xlane.f32.xlu1 %v657_v39 }
 0x31b   :  { %680 = vmax.xlane.f32.xlu0 %v662_v40 }
 0x31d   :  { %682 = vmax.xlane.f32.xlu1 %v665_v41 }
 0x393   :  { %v673_v42 = vpop.xlane.xlu1 %672 }
 0x394   :  { %v686_v43 = vsub.f32 %v646_v27, %v673_v42  ;;  %v669_v44 = vpop.xlane.xlu0 %668 }
 0x395   :  { %v684_v45 = vsub.f32 %v638_v29, %v669_v44 }
 0x396   :  { %v696_v46 = vmul.f32 1.442695, %v686_v43 }
 0x397   :  { %v692_v47 = vmul.f32 1.442695, %v684_v45  ;;  %v675_v48 = vpop.xlane.xlu1 %674 }
 0x398   :  { %1062 = vpow2.f32 %v696_v46  ;;  %v687_v49 = vsub.f32 %v649_v32, %v675_v48  ;;  %v671_v50 = vpop.xlane.xlu0 %670 }
 0x399   :  { %v685_v51 = vsub.f32 %v641_v33, %v671_v50  ;;  %1064 = vpow2.f32 %v692_v47 }
 0x39a   :  { %v698_v52 = vmul.f32 1.442695, %v687_v49 }
 0x39b   :  { %v694_v53 = vmul.f32 1.442695, %v685_v51 }
 0x39c   :  { %1066 = vpow2.f32 %v698_v52 }
 0x39d   :  { %1068 = vpow2.f32 %v694_v53 }
 0x3a2   :  { %v1063_v54 = vpop.eup %1062 }
 0x3a3   :  { %712 = vadd.xlane.f32.xlu0 %v1063_v54  ;;  %v1339_v56 = vpop.eup %1064 }
 0x3a4   :  { %v677_v55 = vpop.xlane.xlu0 %676 }
 0x3a5   :  { %v688_v57 = vsub.f32 %v654_v36, %v677_v55 }
 0x3a6   :  { %v1067_v58 = vpop.eup %1066  ;;  %v679_v59 = vpop.xlane.xlu1 %678 }
 0x3a7   :  { %v700_v60 = vmul.f32 1.442695, %v688_v57  ;;  %v689_v61 = vsub.f32 %v657_v39, %v679_v59  ;;  %714 = vadd.xlane.f32.xlu1 %v1067_v58  ;;  %708 = vadd.xlane.f32.xlu0 %v1339_v56  ;;  %v1069_v1 = vpop.eup %1068 }
 0x3a8   :  { %v681_v62 = vpop.xlane.xlu0 %680 }
 0x3a9   :  { %1070 = vpow2.f32 %v700_v60  ;;  %v702_v63 = vmul.f32 1.442695, %v689_v61  ;;  %v690_v0 = vsub.f32 %v662_v40, %v681_v62 }
 0x3aa   :  { %v683_v2 = vpop.xlane.xlu1 %682 }
 0x3ab   :  { %1072 = vpow2.f32 %v702_v63  ;;  %v704_v3 = vmul.f32 1.442695, %v690_v0  ;;  %v691_v4 = vsub.f32 %v665_v41, %v683_v2  ;;  %710 = vadd.xlane.f32.xlu1 %v1069_v1 }
 0x3ad   :  { %1074 = vpow2.f32 %v704_v3  ;;  %v706_v5 = vmul.f32 1.442695, %v691_v4 }
 0x3af   :  { %1076 = vpow2.f32 %v706_v5 }
 0x3b3   :  { %v1071_v6 = vpop.eup %1070 }
 0x3b4   :  { %716 = vadd.xlane.f32.xlu0 %v1071_v6 }
 0x3b5   :  { %v1073_v7 = vpop.eup %1072 }
 0x3b6   :  { %718 = vadd.xlane.f32.xlu1 %v1073_v7 }
 0x3b7   :  { %v1342_v8 = vpop.eup %1074 }
 0x3b8   :  { %720 = vadd.xlane.f32.xlu0 %v1342_v8 }
 0x3b9   :  { %v1345_v9 = vpop.eup %1076 }
 0x3ba   :  { %722 = vadd.xlane.f32.xlu1 %v1345_v9 }
 0x430   :  { %v713_v10 = vpop.xlane.xlu0 %712 }
 0x431   :  { %1078 = vrcp.f32 %v713_v10 }
 0x434   :  { %v715_v11 = vpop.xlane.xlu1 %714  ;;  %v709_v12 = vpop.xlane.xlu0 %708 }
 0x435   :  { %1080 = vrcp.f32 %v715_v11 }
 0x436   :  { %1082 = vrcp.f32 %v709_v12 }
 0x438   :  { %v711_v13 = vpop.xlane.xlu1 %710 }
 0x439   :  { %1084 = vrcp.f32 %v711_v13 }
 0x43b   :  { %v1079_v14 = vpop.eup %1078 }
 0x43c   :  { %v734_v15 = vmul.f32 %v1079_v14, %v713_v10 }
 0x43e   :  { %v742_v16 = vsub.f32 2.0, %v734_v15 }
 0x43f   :  { %v1081_v17 = vpop.eup %1080 }
 0x440   :  { %v1083_v18 = vpop.eup %1082  ;;  %v735_v19 = vmul.f32 %v1081_v17, %v715_v11  ;;  %v750_v20 = vmul.f32 %v1079_v14, %v742_v16 }
 0x441   :  { %v732_v21 = vmul.f32 %v1083_v18, %v709_v12  ;;  %v717_v22 = vpop.xlane.xlu0 %716 }
 0x442   :  { %v743_v23 = vsub.f32 2.0, %v735_v19  ;;  %1086 = vrcp.f32 %v717_v22  ;;  %v758_v29 = vmul.f32 %v1063_v54, %v750_v20 }
 0x443   :  { %v1085_v24 = vpop.eup %1084  ;;  %v740_v25 = vsub.f32 2.0, %v732_v21  ;;  %v719_v26 = vpop.xlane.xlu1 %718 }
 0x444   :  { %v751_v27 = vmul.f32 %v1081_v17, %v743_v23  ;;  %v733_v28 = vmul.f32 %v1085_v24, %v711_v13  ;;  %1088 = vrcp.f32 %v719_v26 }
 0x445   :  { %v721_v30 = vpop.xlane.xlu0 %720  ;;  %v748_v32 = vmul.f32 %v1083_v18, %v740_v25 }
 0x446   :  { %v759_v31 = vmul.f32 %v1067_v58, %v751_v27  ;;  %v741_v33 = vsub.f32 2.0, %v733_v28  ;;  %1090 = vrcp.f32 %v721_v30 }
 0x447   :  { %v723_v34 = vpop.xlane.xlu1 %722  ;;  %v756_v37 = vmul.f32 %v1339_v56, %v748_v32 }
 0x448   :  { %v893_v35 = vpack.c.bf16 %v759_v31, %v758_v29  ;;  %v749_v36 = vmul.f32 %v1085_v24, %v741_v33  ;;  %1092 = vrcp.f32 %v723_v34 }
 0x44a   :  { %905 = vst [vmem:[#allocation10 + $0x8] sm:$0xff] %v893_v35   ;;  %v757_v38 = vmul.f32 %v1069_v1, %v749_v36 }
 0x44c   :  { %v1087_v39 = vpop.eup %1086  ;;  %v888_v40 = vpack.c.bf16 %v757_v38, %v756_v37 }
 0x44d   :  { %v736_v41 = vmul.f32 %v1087_v39, %v717_v22 }
 0x44e   :  { %v1089_v42 = vpop.eup %1088  ;;  %889 = vst [vmem:[#allocation10] sm:$0xff] %v888_v40  }
 0x44f   :  { %v744_v43 = vsub.f32 2.0, %v736_v41  ;;  %v737_v44 = vmul.f32 %v1089_v42, %v719_v26 }
 0x450   :  { %v1091_v45 = vpop.eup %1090 }
 0x451   :  { %v752_v46 = vmul.f32 %v1087_v39, %v744_v43  ;;  %v745_v47 = vsub.f32 2.0, %v737_v44  ;;  %v738_v48 = vmul.f32 %v1091_v45, %v721_v30 }
 0x452   :  { %v1093_v49 = vpop.eup %1092 }
 0x453   :  { %v753_v50 = vmul.f32 %v1089_v42, %v745_v47  ;;  %v746_v51 = vsub.f32 2.0, %v738_v48  ;;  %v739_v52 = vmul.f32 %v1093_v49, %v723_v34  ;;  %v760_v53 = vmul.f32 %v1071_v6, %v752_v46 }
 0x455   :  { %v761_v54 = vmul.f32 %v1073_v7, %v753_v50  ;;  %v754_v55 = vmul.f32 %v1091_v45, %v746_v51  ;;  %v747_v56 = vsub.f32 2.0, %v739_v52 }
 0x457   :  { %v898_v57 = vpack.c.bf16 %v761_v54, %v760_v53  ;;  %v755_v58 = vmul.f32 %v1093_v49, %v747_v56  ;;  %v762_v59 = vmul.f32 %v1342_v8, %v754_v55 }
 0x459   :  { %906 = vst [vmem:[#allocation10 + $0x10] sm:$0xff] %v898_v57   ;;  %v763_v60 = vmul.f32 %v1345_v9, %v755_v58 }
 0x45b   :  { %v903_v61 = vpack.c.bf16 %v763_v60, %v762_v59 }
 0x45d   :  { %907 = vst [vmem:[#allocation10 + $0x18] sm:$0xff] %v903_v61  }
 0x45e   :  { %1193 = shalt.err (!%p1190_p8)
}
 0x45f   :  { %s1194_s12 = scalar_lea.hbm %s1373_s7, 512 }
 0x460   :  { %p1195_p9 = scmp.ne.s32.totalorder %s1373_s7, %s1194_s12  ;;  %p1198_p10 = scmp.lt.u32.totalorder %s1194_s12, %s1373_s7 }
 0x462   :  { %p1200_p11 = pnand %p1198_p10, %p1195_p9 }
 0x464   :  { %1203 = shalt.err (!%p1200_p11)
}
 0x465   :  { %815 = dma.vmem_to_hbm [thread:$0]  %s810_s8, 512, %s1373_s7, [#allocation4], %s1216_s1, %s1216_s1, %s1217_s25  }
 0x466   :  { %1210 = dma.done.wait [#allocation4], 512  }
 0x467   :  { %1211 = vsyncadd [#allocation4], 4294966784 }
 0x468   :  { %819 = vsyncpa [#allocation3], 1 }
 0x469   :  { %820 = vsyncpa [#allocation6], 1 }
 0x46a   :  { %821 = vsyncpa [#allocation9], 1 }
 0x46b   :  { %822 = vsyncpa [#allocation4], 1 }

</bundles_post_ra>
